<compile_context>
chip_gen: v6e
topology: v6e:2x2x1
jax: 0.10.0
libtpu: 0.0.40
codegen_flags: <defaults>
</compile_context>

<pallas_src>
import functools

import jax
import jax.numpy as jnp
from jax.experimental import pallas as pl
from jax.experimental.pallas import tpu as pltpu

BN_EPS = 1e-5
LANE = 128
SUBLANE_BF16 = 16  # bf16 packs 2 rows / sublane -> batch tiles in multiples of 16


def _round_up(x, m):
    return (x + m - 1) // m * m


def _cdiv(a, b):
    return (a + b - 1) // b


def _vmem_cap_bytes():
    """~3/4 of the per-core physical VMEM (v5e/v6e: 128 MiB -> 96 MiB cap,
    v7x: 64 MiB -> 48 MiB cap).  Falls back to the conservative v7x value."""
    try:
        phys = pltpu.get_tpu_info().vmem_capacity_bytes
    except Exception:
        phys = 64 << 20
    return (phys * 3) // 4


def _soda_mlp_single_tile_kernel(x_ref, w1_ref, w2_ref, b2_ref, o_ref, *, batch):
    """Whole (padded) batch resident in VMEM: one invocation, no recompute."""
    h = jnp.dot(x_ref[...], w1_ref[...], preferred_element_type=jnp.float32)
    rows = x_ref.shape[0]
    if rows != batch:
        # Mask zero-padded batch rows out of the BN statistics.
        row = jax.lax.broadcasted_iota(jnp.int32, h.shape, 0)
        hm = jnp.where(row < batch, h, 0.0)
    else:
        hm = h
    inv_n = 1.0 / batch
    mean = jnp.sum(hm, axis=0, keepdims=True) * inv_n
    var = jnp.sum(hm * hm, axis=0, keepdims=True) * inv_n - mean * mean
    inv_std = jax.lax.rsqrt(var + BN_EPS)
    a = jnp.maximum((h - mean) * inv_std, 0.0).astype(w2_ref.dtype)
    y = jnp.dot(a, w2_ref[...], preferred_element_type=jnp.float32) + b2_ref[...]
    o_ref[...] = y.astype(o_ref.dtype)


def _soda_mlp_kernel(x_ref, w1_ref, w2_ref, b2_ref, o_ref,
                     mu_ref, isd_ref, h_ref=None, *, tile_b, batch, cache_h):
    """grid = (2, n_tiles).  The phase axis is slowest, so every phase-0 step
    (full-batch BN stat accumulation) runs before any phase-1 step.

      phase 0: h = x @ w1 (Linear-1 bias omitted: cancelled exactly by the
               BatchNorm mean subtraction); accumulate sum / sumsq of h
               (padded rows masked); on the last tile convert to mean and
               rsqrt(var + eps).  If enabled, cache h (bf16) in VMEM.
      phase 1: (re)load h, normalize -> ReLU -> second matmul -> store.
    """
    phase = pl.program_id(0)
    tile = pl.program_id(1)
    n_tiles = pl.num_programs(1)

    @pl.when(phase == 0)
    def _():
        h = jnp.dot(x_ref[...], w1_ref[...], preferred_element_type=jnp.float32)

        @pl.when(tile == 0)
        def _():
            mu_ref[...] = jnp.zeros_like(mu_ref)
            isd_ref[...] = jnp.zeros_like(isd_ref)

        if batch % tile_b != 0:
            row = tile * tile_b + jax.lax.broadcasted_iota(jnp.int32, h.shape, 0)
            hm = jnp.where(row < batch, h, 0.0)
        else:
            hm = h
        # Axis-0 reductions run on the XLU and hide under the matmul.
        mu_ref[...] += jnp.sum(hm, axis=0, keepdims=True)
        isd_ref[...] += jnp.sum(hm * hm, axis=0, keepdims=True)

        if cache_h:
            start = pl.multiple_of(tile * tile_b, tile_b)
            h_ref[pl.ds(start, tile_b), :] = h.astype(h_ref.dtype)

        @pl.when(tile == n_tiles - 1)
        def _():
            # Finalize once: sum -> mean, sumsq -> rsqrt(var + eps).
            # (E[h^2] - E[h]^2 in f32 is adequate at these scales.)
            inv_n = 1.0 / batch
            m = mu_ref[...] * inv_n
            v = isd_ref[...] * inv_n - m * m
            mu_ref[...] = m
            isd_ref[...] = jax.lax.rsqrt(v + BN_EPS)

    @pl.when(phase == 1)
    def _():
        if cache_h:
            start = pl.multiple_of(tile * tile_b, tile_b)
            h = h_ref[pl.ds(start, tile_b), :].astype(jnp.float32)
        else:
            h = jnp.dot(x_ref[...], w1_ref[...], preferred_element_type=jnp.float32)
        # BatchNorm (gamma=1, beta=0 at init) + ReLU in f32, cast straight to
        # bf16 for the second MXU matmul.
        a = jnp.maximum((h - mu_ref[...]) * isd_ref[...], 0.0).astype(w2_ref.dtype)
        y = jnp.dot(a, w2_ref[...], preferred_element_type=jnp.float32) + b2_ref[...]
        o_ref[...] = y.astype(o_ref.dtype)


def soda_mlp(x, w1_t, b1, w2_t, b2, *, max_tile_b=None, allow_h_cache=True):
    """SODAMLP forward.

    x: [B, P] f32; w1_t: [P, H]; b1: [1, H]; w2_t: [H, O]; b2: [1, O] -> [B, O] f32.
    b1 is accepted for API parity but unused: under train-mode BatchNorm the
    additive Linear-1 bias is cancelled exactly by the mean subtraction.
    """
    del b1
    B, P = x.shape
    H = w1_t.shape[1]
    O = w2_t.shape[1]

    # Lane-pad feature dims to 128 so matmul results / output stores are
    # lane-dense (no masked vst); pad is sliced off at the end.
    p_pad = _round_up(P, LANE)
    h_pad = _round_up(H, LANE)
    o_pad = _round_up(O, LANE)

    cap = _vmem_cap_bytes()
    # Bigger batch tiles on 128-MiB parts (v5e/v6e); smaller on v7x (64 MiB).
    tile_b_max = 512 if cap >= (80 << 20) else 256
    if max_tile_b is not None:
        tile_b_max = max(SUBLANE_BF16, max_tile_b)

    weights_bytes = (p_pad * h_pad + h_pad * o_pad) * 2 + 8 * o_pad * 4

    def per_tile_bytes(tb):
        return (2 * tb * p_pad * 2          # x tile (bf16, double-buffered)
                + 2 * tb * o_pad * 4        # out tile (f32, double-buffered)
                + 2 * 8 * h_pad * 4         # BN stat scratch (sublane-padded)
                + 4 * tb * h_pad * 4        # live f32 intermediates
                + tb * o_pad * 4)

    # Choose tile_b so batch padding is at most one 16-row group, then shrink
    # if a tile (plus resident weights) does not fit the VMEM cap.
    tile_b = _round_up(_cdiv(B, _cdiv(B, tile_b_max)), SUBLANE_BF16)
    while tile_b > SUBLANE_BF16 and weights_bytes + per_tile_bytes(tile_b) > cap:
        tile_b = _round_up(tile_b // 2, SUBLANE_BF16)
    # TODO(synk): if weights_bytes alone exceeds the cap (huge P/H on v7x), a
    # K-tiled weight path is needed; not required for SODAMLP-sized layers.

    b_pad = _round_up(B, tile_b)
    n_tiles = b_pad // tile_b

    # bf16 MXU operands; biases and all BN math stay f32.
    x_p = jnp.pad(x, ((0, b_pad - B), (0, p_pad - P))).astype(jnp.bfloat16)
    w1_p = jnp.pad(w1_t, ((0, p_pad - P), (0, h_pad - H))).astype(jnp.bfloat16)
    w2_p = jnp.pad(w2_t, ((0, h_pad - H), (0, o_pad - O))).astype(jnp.bfloat16)
    b2_p = jnp.pad(b2.reshape(1, -1).astype(jnp.float32), ((0, 0), (0, o_pad - O)))

    if n_tiles == 1:
        # ---- single-shot fast path: no grid, no 2-phase overhead ----
        est = weights_bytes + per_tile_bytes(tile_b)
        out = pl.pallas_call(
            functools.partial(_soda_mlp_single_tile_kernel, batch=B),
            out_shape=jax.ShapeDtypeStruct((b_pad, o_pad), jnp.float32),
            compiler_params=pltpu.CompilerParams(
                vmem_limit_bytes=min(cap, max(16 << 20, 2 * est))),
            cost_estimate=pl.CostEstimate(
                flops=2 * b_pad * p_pad * h_pad + 2 * b_pad * h_pad * o_pad,
                transcendentals=h_pad,
                bytes_accessed=(b_pad * p_pad * 2
                                + (p_pad * h_pad + h_pad * o_pad) * 2
                                + o_pad * 4 + b_pad * o_pad * 4)),
        )(x_p, w1_p, w2_p, b2_p)
        return out[:B, :O]

    # ---- general path: 2-phase grid over batch tiles ----
    h_cache_bytes = b_pad * h_pad * 2
    base_bytes = weights_bytes + per_tile_bytes(tile_b)
    cache_h = allow_h_cache and (base_bytes + h_cache_bytes) <= int(0.85 * cap)

    est = base_bytes + (h_cache_bytes if cache_h else 0)
    vmem_limit = min(cap, max(16 << 20, int(1.5 * est) + (2 << 20)))

    kernel = functools.partial(_soda_mlp_kernel, tile_b=tile_b, batch=B,
                               cache_h=cache_h)

    if cache_h:
        # Phase 1 reads h from the VMEM cache; freeze the x block index there
        # so x is only read from HBM once.
        x_map = lambda ph, i: ((1 - ph) * i + ph * (n_tiles - 1), 0)
    else:
        x_map = lambda ph, i: (i, 0)

    def call(single_buffer_weights):
        if single_buffer_weights:
            # Constant index_map -> operand is resident; a single VMEM buffer
            # suffices (double-buffering a never-changing block wastes VMEM).
            res = lambda shp: pl.BlockSpec(shp, lambda ph, i: (0, 0),
                                           pipeline_mode=pl.Buffered(1))
        else:
            res = lambda shp: pl.BlockSpec(shp, lambda ph, i: (0, 0))

        scratch = [pltpu.VMEM((1, h_pad), jnp.float32),   # sum   -> mean
                   pltpu.VMEM((1, h_pad), jnp.float32)]   # sumsq -> rsqrt(var+eps)
        if cache_h:
            scratch.append(pltpu.VMEM((b_pad, h_pad), jnp.bfloat16))  # h cache

        return pl.pallas_call(
            kernel,
            out_shape=jax.ShapeDtypeStruct((b_pad, o_pad), jnp.float32),
            grid_spec=pltpu.PrefetchScalarGridSpec(
                num_scalar_prefetch=0,
                grid=(2, n_tiles),
                in_specs=[
                    pl.BlockSpec((tile_b, p_pad), x_map),   # x tile
                    res((p_pad, h_pad)),                    # w1 (resident)
                    res((h_pad, o_pad)),                    # w2 (resident)
                    res((1, o_pad)),                        # b2 (resident)
                ],
                # Constant block index during phase 0 => the (stale) output
                # buffer is never flushed to HBM until phase 1 has filled it.
                out_specs=pl.BlockSpec((tile_b, o_pad), lambda ph, i: (ph * i, 0)),
                scratch_shapes=scratch,
            ),
            compiler_params=pltpu.CompilerParams(
                # The batch-tile axis carries the cross-tile BN accumulator in
                # phase 0 and reads the shared stats in phase 1, so it must
                # stay "arbitrary" (see v7x megacore TODO at the top).
                dimension_semantics=("arbitrary", "arbitrary"),
                vmem_limit_bytes=vmem_limit,
            ),
            cost_estimate=pl.CostEstimate(
                flops=(1 if cache_h else 2) * 2 * b_pad * p_pad * h_pad
                      + 2 * b_pad * h_pad * o_pad,
                transcendentals=h_pad,
                bytes_accessed=((1 if cache_h else 2) * b_pad * p_pad * 2
                                + (p_pad * h_pad + h_pad * o_pad) * 2
                                + o_pad * 4 + b_pad * o_pad * 4),
            ),
        )(x_p, w1_p, w2_p, b2_p)

    try:
        out = call(single_buffer_weights=True)
    except Exception:
        # pl.Buffered(1) unavailable in this runtime -> default double-buffering.
        out = call(single_buffer_weights=False)

    return out[:B, :O]


def orthogonal(key, rows, cols, dtype=jnp.float32):
    """Deterministic orthogonal init (matches nn.init.orthogonal_ semantics)."""
    n = max(rows, cols)
    a = jax.random.normal(key, (n, min(rows, cols)), jnp.float32)
    q, r = jnp.linalg.qr(a)
    d = jnp.diagonal(r)
    q = q * jnp.where(d >= 0, 1.0, -1.0)[None, :]
    q = q[:rows, :cols] if rows >= cols else q.T[:rows, :cols]
    return q.astype(dtype)


def ref_forward(x, w1_t, b1, w2_t, b2):
    """Pure-JAX reference mirroring the bf16 MXU input casts / f32 accumulation."""
    xb = x.astype(jnp.bfloat16).astype(jnp.float32)
    w1b = w1_t.astype(jnp.bfloat16).astype(jnp.float32)
    w2b = w2_t.astype(jnp.bfloat16).astype(jnp.float32)
    h = xb @ w1b + b1
    mean = h.mean(axis=0, keepdims=True)
    var = ((h - mean) ** 2).mean(axis=0, keepdims=True)
    a = jnp.maximum((h - mean) * jax.lax.rsqrt(var + BN_EPS), 0.0)
    return a.astype(jnp.bfloat16).astype(jnp.float32) @ w2b + b2


if __name__ == "__main__":
    projection_dim, hidden_dim, out_dim = 32, 64, 32

    key = jax.random.PRNGKey(0)
    kx, k1, k2 = jax.random.split(key, 3)

    # Linear weights: orthogonal init, zero bias (per weight_init).
    # PyTorch Linear weight is [out, in]; we store the transpose [in, out].
    w1 = orthogonal(k1, hidden_dim, projection_dim)   # [H, P]
    w2 = orthogonal(k2, out_dim, hidden_dim)          # [O, H]
    w1_t, w2_t = w1.T, w2.T
    b1 = jnp.zeros((1, hidden_dim), jnp.float32)
    b2 = jnp.zeros((1, out_dim), jnp.float32)

    def check(batch, **kw):
        xk = jax.random.fold_in(kx, batch)
        x = jax.random.normal(xk, (batch, projection_dim), jnp.float32)
        out = jax.block_until_ready(soda_mlp(x, w1_t, b1, w2_t, b2, **kw))
        ref = ref_forward(x, w1_t, b1, w2_t, b2)
        assert out.shape == (batch, out_dim)
        err = float(jnp.max(jnp.abs(out - ref)))
        assert jnp.allclose(out, ref, atol=2e-2, rtol=2e-2), (
            f"batch={batch} kw={kw} max abs err {err}")

    # Single-tile fast path (module-sized small batch).
    check(8)
    # Multi-tile 2-phase path: h cached in VMEM, padded batch rows masked.
    check(100, max_tile_b=48)
    # Multi-tile 2-phase path with phase-1 recompute (h cache disabled).
    check(100, max_tile_b=48, allow_h_cache=False)

    print("KERNEL_OK")
</pallas_src>

<mosaic_0001>
module attributes {stable_mosaic.version = 11 : i64} {
  func.func @_soda_mlp_single_tile_kernel(%arg0: memref<16x128xbf16, #tpu.memory_space<vmem>>, %arg1: memref<128x128xbf16, #tpu.memory_space<vmem>>, %arg2: memref<128x128xbf16, #tpu.memory_space<vmem>>, %arg3: memref<1x128xf32, #tpu.memory_space<vmem>>, %arg4: memref<16x128xf32, #tpu.memory_space<vmem>>) attributes {dimension_semantics = [], scalar_prefetch = 0 : i64, scratch_operands = 0 : i64, tpu.core_type = #tpu.core_type<tc>} {
    %c0 = arith.constant 0 : index
    %c0_0 = arith.constant 0 : index
    %0 = vector.load %arg0[%c0, %c0_0] : memref<16x128xbf16, #tpu.memory_space<vmem>>, vector<16x128xbf16>
    %c0_1 = arith.constant 0 : index
    %c0_2 = arith.constant 0 : index
    %1 = vector.load %arg1[%c0_1, %c0_2] : memref<128x128xbf16, #tpu.memory_space<vmem>>, vector<128x128xbf16>
    %cst = arith.constant dense<0.000000e+00> : vector<16x128xf32>
    %2 = tpu.matmul %0, %1, %cst {dimension_numbers = #tpu.dot_dimension_numbers<[1], [0], [0], [1], [0, 0, 1, 1], [], []>} : vector<16x128xbf16>, vector<128x128xbf16>, vector<16x128xf32> -> vector<16x128xf32>
    %3 = tpu.iota {dimensions = array<i32: 0>} : vector<16x128xi32>
    %c8_i32 = arith.constant 8 : i32
    %4 = vector.broadcast %c8_i32 : i32 to vector<16x128xi32>
    %5 = arith.cmpi slt, %3, %4 : vector<16x128xi32>
    %cst_3 = arith.constant 0.000000e+00 : f32
    %6 = vector.broadcast %cst_3 : f32 to vector<16x128xf32>
    %7 = arith.select %5, %2, %6 : vector<16x128xi1>, vector<16x128xf32>
    %cst_4 = arith.constant dense<0.000000e+00> : vector<128xf32>
    %8 = vector.multi_reduction <add>, %7, %cst_4 [0] : vector<16x128xf32> to vector<128xf32>
    %9 = vector.shape_cast %8 : vector<128xf32> to vector<1x128xf32>
    %cst_5 = arith.constant 1.250000e-01 : f32
    %10 = vector.broadcast %cst_5 : f32 to vector<1x128xf32>
    %11 = arith.mulf %9, %10 : vector<1x128xf32>
    %12 = arith.mulf %7, %7 : vector<16x128xf32>
    %cst_6 = arith.constant dense<0.000000e+00> : vector<128xf32>
    %13 = vector.multi_reduction <add>, %12, %cst_6 [0] : vector<16x128xf32> to vector<128xf32>
    %14 = vector.shape_cast %13 : vector<128xf32> to vector<1x128xf32>
    %cst_7 = arith.constant 1.250000e-01 : f32
    %15 = vector.broadcast %cst_7 : f32 to vector<1x128xf32>
    %16 = arith.mulf %14, %15 : vector<1x128xf32>
    %17 = arith.mulf %11, %11 : vector<1x128xf32>
    %18 = arith.subf %16, %17 : vector<1x128xf32>
    %cst_8 = arith.constant 9.99999974E-6 : f32
    %19 = vector.broadcast %cst_8 : f32 to vector<1x128xf32>
    %20 = arith.addf %18, %19 : vector<1x128xf32>
    %21 = math.rsqrt %20 : vector<1x128xf32>
    %22 = vector.broadcast %11 : vector<1x128xf32> to vector<16x128xf32>
    %23 = arith.subf %2, %22 : vector<16x128xf32>
    %24 = vector.broadcast %21 : vector<1x128xf32> to vector<16x128xf32>
    %25 = arith.mulf %23, %24 : vector<16x128xf32>
    %cst_9 = arith.constant 0.000000e+00 : f32
    %26 = vector.broadcast %cst_9 : f32 to vector<16x128xf32>
    %27 = arith.maximumf %25, %26 : vector<16x128xf32>
    %28 = arith.truncf %27 : vector<16x128xf32> to vector<16x128xbf16>
    %c0_10 = arith.constant 0 : index
    %c0_11 = arith.constant 0 : index
    %29 = vector.load %arg2[%c0_10, %c0_11] : memref<128x128xbf16, #tpu.memory_space<vmem>>, vector<128x128xbf16>
    %cst_12 = arith.constant dense<0.000000e+00> : vector<16x128xf32>
    %30 = tpu.matmul %28, %29, %cst_12 {dimension_numbers = #tpu.dot_dimension_numbers<[1], [0], [0], [1], [0, 0, 1, 1], [], []>} : vector<16x128xbf16>, vector<128x128xbf16>, vector<16x128xf32> -> vector<16x128xf32>
    %c0_13 = arith.constant 0 : index
    %c0_14 = arith.constant 0 : index
    %31 = vector.load %arg3[%c0_13, %c0_14] : memref<1x128xf32, #tpu.memory_space<vmem>>, vector<1x128xf32>
    %32 = vector.broadcast %31 : vector<1x128xf32> to vector<16x128xf32>
    %33 = arith.addf %30, %32 : vector<16x128xf32>
    %c0_15 = arith.constant 0 : index
    %c0_16 = arith.constant 0 : index
    %34 = vector.load %arg4[%c0_15, %c0_16] : memref<16x128xf32, #tpu.memory_space<vmem>>, vector<16x128xf32>
    tpu.vector_store %arg4[%c0_15, %c0_16], %33 {strides = array<i32>} : memref<16x128xf32, #tpu.memory_space<vmem>>, vector<16x128xf32>,
    return
  }
}

</mosaic_0001>

<bundles_post_ra>
// kernel: tpu_custom_call.1
= control target key start
LH: loop header
LB: loop body
LE: loop exit
PB: predicated region body
PF: predicated region fallthrough
CT: control target
= control target key end

     0   :  { %9 = vsyncpa [#allocation3], 0  ;;  %s582_s0 = inlined_call_operand.hbm [shape: bf16[16,128], index: 0, kind: input, shape index: {}]   ;;  %s583_s1 = inlined_call_operand.hbm [shape: bf16[128,128], index: 1, kind: input, shape index: {}]   ;;  %s584_s2 = inlined_call_operand.hbm [shape: bf16[128,128], index: 2, kind: input, shape index: {}]   ;;  %s585_s3 = inlined_call_operand.vmem [shape: f32[1,128], index: 3, kind: input, shape index: {}]   ;;  %s586_s4 = inlined_call_operand.hbm [shape: f32[16,128], index: 4, kind: output, shape index: {}]  }
   0x1   :  { %10 = vsyncpa [#allocation6], 0 }
   0x2   :  { %11 = vsyncpa [#allocation4], 0  ;;  %s532_s15 = smov [#allocation5]   ;;  %s533_s17 = smov [#allocation2]  }
   0x3   :  { %s29_s16 = sshll.u32 %s532_s15, 4  ;;  %s17_s18 = sshll.u32 %s533_s17, 4  ;;  %s30_s16 = int_to_ptr.vmem [resolvable:$true] %s29_s16  ;;  %s18_s18 = int_to_ptr.vmem [resolvable:$true] %s17_s18 }
   0x4   :  { %s454_s19 = scalar_lea.vmem %s30_s16, 1024  ;;  %p459_p1 = scmp.lt.s32.totalorder %s30_s16, %s30_s16 }
   0x5   :  { %p455_p0 = scmp.ne.s32.totalorder %s30_s16, %s454_s19  ;;  %p460_p2 = scmp.lt.s32.totalorder %s454_s19, %s454_s19 }
   0x7   :  { %p461_p3 = por %p460_p2, %p459_p1 }
   0x9   :  { %p462_p4 = pnand %p461_p3, %p455_p0 }
   0xb   :  { %465 = shalt.err (!%p462_p4)
}
   0xc   :  { %s534_s20 = smov 64   ;;  %s535_s21 = smov 4  }
   0xd   :  { %35 = dma.hbm_to_vmem [thread:$0]  %s583_s1, 1024, %s30_s16, [#allocation6], %s534_s20, %s534_s20, %s535_s21  }
   0xe   :  { %s474_s24 = scalar_lea.vmem %s18_s18, 128  ;;  %p479_p6 = scmp.lt.s32.totalorder %s18_s18, %s18_s18 }
   0xf   :  { %p475_p5 = scmp.ne.s32.totalorder %s18_s18, %s474_s24  ;;  %p480_p7 = scmp.lt.s32.totalorder %s474_s24, %s474_s24 }
  0x11   :  { %p481_p8 = por %p480_p7, %p479_p6 }
  0x13   :  { %p482_p9 = pnand %p481_p8, %p475_p5 }
  0x15   :  { %485 = shalt.err (!%p482_p9)
}
  0x16   :  { %23 = dma.hbm_to_vmem [thread:$0]  %s582_s0, 128, %s18_s18, [#allocation3], %s534_s20, %s534_s20, %s535_s21  }
  0x17   :  { %s536_s27 = smov [#allocation7]  }
  0x18   :  { %s41_s28 = sshll.u32 %s536_s27, 4  ;;  %s42_s28 = int_to_ptr.vmem [resolvable:$true] %s41_s28 }
  0x19   :  { %s494_s29 = scalar_lea.vmem %s42_s28, 1024  ;;  %p499_p11 = scmp.lt.s32.totalorder %s42_s28, %s42_s28 }
  0x1a   :  { %p495_p10 = scmp.ne.s32.totalorder %s42_s28, %s494_s29  ;;  %p500_p12 = scmp.lt.s32.totalorder %s494_s29, %s494_s29 }
  0x1c   :  { %p501_p13 = por %p500_p12, %p499_p11 }
  0x1e   :  { %p502_p0 = pnand %p501_p13, %p495_p10 }
  0x20   :  { %505 = shalt.err (!%p502_p0)
}
  0x21   :  { %47 = dma.hbm_to_vmem [thread:$0]  %s584_s2, 1024, %s42_s28, [#allocation6], %s534_s20, %s534_s20, %s535_s21  }
  0x22   :  { %526 = dma.done.wait [#allocation3], 128  }
  0x23   :  { %527 = vsyncadd [#allocation3], 4294967168 }
  0x24   :  { %528 = dma.done.wait [#allocation6], 2048  }
  0x25   :  { %529 = vsyncadd [#allocation6], 4294965248  ;;  %v537_v0 = vmov 0.0   ;;  %vm538_vm0 = vmmov 0   ;;  %v427_v1 = vld [vmem:[#allocation5 + $0x38] sm:$0xff]   ;;  %v428_v2 = vld [vmem:[#allocation5 + $0x30] sm:$0xff]  }
  0x26   :  { %377 = vmatprep.subr.bf16.mxu0 %v537_v0  ;;  %393 = vmatprep.mubr.msk.bf16.mxu0 %vm538_vm0, %v537_v0  ;;  %v429_v3 = vld [vmem:[#allocation5 + $0x28] sm:$0xff]   ;;  %v430_v4 = vld [vmem:[#allocation5 + $0x20] sm:$0xff]   ;;  %v431_v5 = vld [vmem:[#allocation5 + $0x18] sm:$0xff]   ;;  %s539_s5 = smov [#allocation8]  }
  0x27   :  { %397 = vmatprep.subr.bf16.mxu1 %v537_v0  ;;  %413 = vmatprep.mubr.msk.bf16.mxu1 %vm538_vm0, %v537_v0  ;;  %v432_v6 = vld [vmem:[#allocation5 + $0x10] sm:$0xff]   ;;  %v433_v7 = vld [vmem:[#allocation5 + $0x8] sm:$0xff]   ;;  %v434_v8 = vld [vmem:[#allocation5] sm:$0xff]   ;;  %s328_s6 = sshll.u32 %s539_s5, 4  ;;  %s329_s6 = int_to_ptr.vmem [resolvable:$true] %s328_s6 }
  0x28   :  { %378 = vmatpush3.bf16.msra.mxu0 %v427_v1  ;;  %v435_v9 = vld [vmem:[#allocation2] sm:$0xff]   ;;  %v437_v11 = vld [vmem:[#allocation7 + $0x30] sm:$0xff]   ;;  %v438_v12 = vld [vmem:[#allocation7 + $0x28] sm:$0xff]   ;;  %s506_s7 = scalar_lea.vmem %s329_s6, 256  ;;  %p511_p2 = scmp.lt.s32.totalorder %s329_s6, %s329_s6 }
  0x29   :  { %379 = vmatprep.subr.bf16.mxu0 %v537_v0  ;;  %v436_v10 = vld [vmem:[#allocation7 + $0x38] sm:$0xff]   ;;  %v439_v13 = vld [vmem:[#allocation7 + $0x20] sm:$0xff]   ;;  %v441_v15 = vld [vmem:[#allocation7 + $0x10] sm:$0xff]   ;;  %p507_p1 = scmp.ne.s32.totalorder %s329_s6, %s506_s7  ;;  %p512_p3 = scmp.lt.s32.totalorder %s506_s7, %s506_s7 }
  0x2a   :  { %398 = vmatpush3.bf16.msra.mxu1 %v436_v10  ;;  %v440_v14 = vld [vmem:[#allocation7 + $0x18] sm:$0xff]   ;;  %v442_v16 = vld [vmem:[#allocation7 + $0x8] sm:$0xff]   ;;  %v443_v17 = vld [vmem:[#allocation7] sm:$0xff]  }
  0x2b   :  { %399 = vmatprep.subr.bf16.mxu1 %v537_v0  ;;  %v350_v48 = vld [vmem:[%s585_s3] ss:$0 sm:$0xff]  ;;  %p513_p4 = por %p512_p3, %p511_p2 }
  0x2c   :  { %380 = vmatpush3.bf16.msra.mxu0 %v428_v2 }
  0x2d   :  { %381 = vmatprep.subr.bf16.mxu0 %v537_v0  ;;  %p514_p5 = pnand %p513_p4, %p507_p1 }
  0x2e   :  { %400 = vmatpush3.bf16.msra.mxu1 %v437_v11 }
  0x2f   :  { %401 = vmatprep.subr.bf16.mxu1 %v537_v0 }
  0x30   :  { %382 = vmatpush3.bf16.msra.mxu0 %v429_v3 }
  0x31   :  { %383 = vmatprep.subr.bf16.mxu0 %v537_v0 }
  0x32   :  { %402 = vmatpush3.bf16.msra.mxu1 %v438_v12 }
  0x33   :  { %403 = vmatprep.subr.bf16.mxu1 %v537_v0 }
  0x34   :  { %384 = vmatpush3.bf16.msra.mxu0 %v430_v4 }
  0x35   :  { %385 = vmatprep.subr.bf16.mxu0 %v537_v0 }
  0x36   :  { %404 = vmatpush3.bf16.msra.mxu1 %v439_v13 }
  0x37   :  { %405 = vmatprep.subr.bf16.mxu1 %v537_v0 }
  0x38   :  { %386 = vmatpush3.bf16.msra.mxu0 %v431_v5 }
  0x39   :  { %387 = vmatprep.subr.bf16.mxu0 %v537_v0 }
  0x3a   :  { %406 = vmatpush3.bf16.msra.mxu1 %v440_v14 }
  0x3b   :  { %407 = vmatprep.subr.bf16.mxu1 %v537_v0 }
  0x3c   :  { %388 = vmatpush3.bf16.msra.mxu0 %v432_v6 }
  0x3d   :  { %389 = vmatprep.subr.bf16.mxu0 %v537_v0 }
  0x3e   :  { %408 = vmatpush3.bf16.msra.mxu1 %v441_v15 }
  0x3f   :  { %409 = vmatprep.subr.bf16.mxu1 %v537_v0 }
  0x40   :  { %390 = vmatpush3.bf16.msra.mxu0 %v433_v7 }
  0x41   :  { %391 = vmatprep.subr.bf16.mxu0 %v537_v0 }
  0x42   :  { %410 = vmatpush3.bf16.msra.mxu1 %v442_v16 }
  0x43   :  { %411 = vmatprep.subr.bf16.mxu1 %v537_v0 }
  0x44   :  { %392 = vmatpush3.bf16.msra.mxu0 %v434_v8 }
  0x46   :  { %412 = vmatpush3.bf16.msra.mxu1 %v443_v17 }
  0x47   :  { %394 = vmatmul.mubr.bf16.vlgmr.msra.gmra.mxu0 %v435_v9 }
 0x107   :  { %v166_v18 = vpop.f32.mrf.mxu0 }
 0x108   :  { %v181_v19 = vrot.slane %v166_v18, 4  ;;  %v188_v20 = vmul.f32 %v166_v18, %v166_v18 }
 0x109   :  { %v395_v21 = vpop.f32.mrf.mxu0 }
 0x10a   :  { %v182_v22 = vadd.f32 %v181_v19, %v166_v18  ;;  %v191_v23 = vrot.slane %v188_v20, 4 }
 0x10b   :  { %v169_v24 = vpop.f32.mrf.mxu0 }
 0x10c   :  { %v183_v25 = vrot.slane %v182_v22, 2  ;;  %v192_v26 = vadd.f32 %v191_v23, %v188_v20 }
 0x10d   :  { %v396_v27 = vpop.f32.mrf.mxu0 }
 0x10e   :  { %v193_v28 = vrot.slane %v192_v26, 2  ;;  %v184_v29 = vadd.f32 %v183_v25, %v182_v22 }
 0x110   :  { %v194_v30 = vadd.f32 %v193_v28, %v192_v26  ;;  %v185_v31 = vrot.slane %v184_v29, 1 }
 0x112   :  { %v195_v32 = vrot.slane %v194_v30, 1  ;;  %v186_v33 = vadd.f32 %v185_v31, %v184_v29 }
 0x114   :  { %v196_v34 = vadd.f32 %v195_v32, %v194_v30  ;;  %v187_v35 = vmul.f32 0.125, %v186_v33 }
 0x116   :  { %v197_v36 = vmul.f32 0.125, %v196_v34  ;;  %v198_v37 = vmul.f32 %v187_v35, %v187_v35  ;;  %v203_v40 = vsub.f32 %v169_v24, %v187_v35  ;;  %v202_v41 = vsub.f32 %v166_v18, %v187_v35 }
 0x118   :  { %v199_v38 = vsub.f32 %v197_v36, %v198_v37 }
 0x11a   :  { %v200_v39 = vadd.f32 1e-05, %v199_v38 }
 0x11c   :  { %444 = vrsqrt.f32 %v200_v39 }
 0x129   :  { %v445_v42 = vpop.eup %444 }
 0x12a   :  { %v205_v43 = vmul.f32 %v445_v42, %v203_v40  ;;  %v204_v44 = vmul.f32 %v445_v42, %v202_v41 }
 0x12c   :  { %v207_v45 = vmax.f32 %v205_v43, 0.0  ;;  %v206_v46 = vmax.f32 %v204_v44, 0.0 }
 0x12e   :  { %v208_v47 = vpack.c.bf16 %v207_v45, %v206_v46 }
 0x130   :  { %414 = vmatmul.mubr.bf16.vlgmr.msra.gmra.mxu1 %v208_v47 }
 0x1f0   :  { %v314_v49 = vpop.f32.mrf.mxu1 }
 0x1f1   :  { %v315_v50 = vadd.f32 %v350_v48, %v314_v49 }
 0x1f2   :  { %v415_v51 = vpop.f32.mrf.mxu1 }
 0x1f3   :  { %321 = vst [vmem:[#allocation8] sm:$0xff] %v315_v50 }
 0x1f4   :  { %v317_v52 = vpop.f32.mrf.mxu1 }
 0x1f5   :  { %v318_v53 = vadd.f32 %v350_v48, %v317_v52 }
 0x1f6   :  { %v416_v54 = vpop.f32.mrf.mxu1 }
 0x1f7   :  { %322 = vst [vmem:[#allocation8 + $0x8] sm:$0xff] %v318_v53 }
 0x1f8   :  { %517 = shalt.err (!%p514_p5)
}
 0x1f9   :  { %s540_s8 = smov 128   ;;  %s541_s3 = smov 8  }
 0x1fa   :  { %334 = dma.vmem_to_hbm [thread:$0]  %s329_s6, 256, %s586_s4, [#allocation4], %s540_s8, %s540_s8, %s541_s3  }
 0x1fb   :  { %530 = dma.done.wait [#allocation4], 256  }
 0x1fc   :  { %531 = vsyncadd [#allocation4], 4294967040 }
 0x1fd   :  { %338 = vsyncpa [#allocation3], 1 }
 0x1fe   :  { %339 = vsyncpa [#allocation6], 1 }
 0x1ff   :  { %340 = vsyncpa [#allocation4], 1 }

</bundles_post_ra>
